<compile_context>
chip_gen: v5e
topology: v5e:2x2
jax: 0.10.0
libtpu: 0.0.40
codegen_flags: <defaults>
</compile_context>

<pallas_src>
import functools
import math

import jax
import jax.numpy as jnp
from jax import lax
from jax.experimental import pallas as pl
from jax.experimental.pallas import tpu as pltpu


def _shift_right(a):
    """result[..., k] = a[..., k-1] (cyclic; the wrapped column is fixed by caller)."""
    lt = a.shape[-1]
    if lt % 128 == 0:
        return pltpu.roll(a, 1, a.ndim - 1)          # XLU lane rotate
    return jnp.roll(a, 1, axis=-1)                   # small / unaligned tiles


def _shift_left(a):
    """result[..., k] = a[..., k+1] (cyclic; the wrapped column is fixed by caller)."""
    lt = a.shape[-1]
    if lt % 128 == 0:
        return pltpu.roll(a, lt - 1, a.ndim - 1)
    return jnp.roll(a, -1, axis=-1)


def _upsample_kernel(with_conv, compute_dtype, *refs):
    if with_conv:
        x_ref, lh_ref, rh_ref, w_ref, b_ref, out_ref = refs
    else:
        x_ref, lh_ref, rh_ref, out_ref = refs

    x = x_ref[...].astype(jnp.float32)            # (C, Lt)
    C, Lt = x.shape
    lh = lh_ref[...].astype(jnp.float32)          # (C, 1) == x_global[tile_start-1] (clamped)
    rh = rh_ref[...].astype(jnp.float32)          # (C, 1) == x_global[tile_end]     (clamped)

    lane = lax.broadcasted_iota(jnp.int32, (C, Lt), 1)
    first_lane = lane == 0
    last_lane = lane == Lt - 1

    # Shifted copies of x across the tile boundary (clamped at sequence edges).
    x_prev = jnp.where(first_lane, lh, _shift_right(x))   # x[k-1]
    x_next = jnp.where(last_lane, rh, _shift_left(x))     # x[k+1]

    # Linear interpolation, scale_factor=2, align_corners=False:
    #   y[2k]   = 0.25 x[k-1] + 0.75 x[k]      (even stream e)
    #   y[2k+1] = 0.75 x[k]   + 0.25 x[k+1]    (odd  stream o)
    e = 0.25 * x_prev + 0.75 * x
    o = 0.75 * x + 0.25 * x_next

    if not with_conv:
        out_ref[0] = e.astype(out_ref.dtype)
        out_ref[1] = o.astype(out_ref.dtype)
        return

    j = pl.program_id(1)
    is_first = j == 0
    is_last = j == pl.num_programs(1) - 1

    # Conv1d(k=3, pad=1) on the interleaved stream y, expressed per stream:
    #   z[2k]   = w0 @ y[2k-1] + w1 @ y[2k]   + w2 @ y[2k+1] = w0@o_prev + w1@e + w2@o
    #   z[2k+1] = w0 @ y[2k]   + w1 @ y[2k+1] + w2 @ y[2k+2] = w0@e + w1@o + w2@e_next
    # with zero padding at the global ends (y[-1] = y[2L] = 0).  The neighbour
    # streams come straight from x_prev / x_next (no extra rolls):
    #   o_prev[k] = y[2k-1] = 0.75 x[k-1] + 0.25 x[k]
    #   e_next[k] = y[2k+2] = 0.25 x[k]   + 0.75 x[k+1]
    o_prev = jnp.where(jnp.logical_and(is_first, first_lane), 0.0,
                       0.75 * x_prev + 0.25 * x)
    e_next = jnp.where(jnp.logical_and(is_last, last_lane), 0.0,
                       0.25 * x + 0.75 * x_next)

    if compute_dtype is not None:
        e_c = e.astype(compute_dtype)
        o_c = o.astype(compute_dtype)
        o_prev = o_prev.astype(compute_dtype)
        e_next = e_next.astype(compute_dtype)
    else:
        e_c, o_c = e, o

    # Fuse the three taps along K: two (C, 3C) @ (3C, Lt) MXU calls instead of
    # six (C, C) @ (C, Lt) ones.  w_ref is [w0 | w1 | w2] along its second axis.
    r_even = jnp.concatenate([o_prev, e_c, o_c], axis=0)   # (3C, Lt)
    r_odd = jnp.concatenate([e_c, o_c, e_next], axis=0)    # (3C, Lt)

    w = w_ref[...]
    b = b_ref[...].astype(jnp.float32)                     # (C, 1)
    z_even = jnp.dot(w, r_even, preferred_element_type=jnp.float32) + b
    z_odd = jnp.dot(w, r_odd, preferred_element_type=jnp.float32) + b

    out_ref[0] = z_even.astype(out_ref.dtype)
    out_ref[1] = z_odd.astype(out_ref.dtype)


def _pick_l_tile(L, C, budget_bytes, with_conv):
    """Largest lane tile (multiple of 128 dividing L, or L itself) that fits the budget."""
    # Per-lane-column f32 working set: double-buffered input + output tiles plus
    # in-kernel temporaries (x_prev/x_next, e/o, o_prev/e_next, matmul operands, z).
    per_lane = 4 * C * (24 if with_conv else 14)
    fixed = (2 * (3 * C * C + C) * 4) if with_conv else 0   # resident weights + bias
    avail = max(budget_bytes - fixed, per_lane * 128)
    max_lt = max(128, avail // per_lane)
    if L <= max_lt:
        return L
    lt = (max_lt // 128) * 128
    while lt >= 128 and L % lt:
        lt -= 128
    return lt if lt >= 128 else L


def upsample(x, weight=None, bias=None, *, with_conv=True, interleave=True,
             compute_dtype=None, l_tile_budget_bytes=36 * 1024 * 1024):
    """1-D Upsample(scale=2, linear) [+ Conv1d(C, C, 3, padding=1)].

    x: (N, C, L) float.  weight: (C, C, 3), bias: (C,) when with_conv.
    Returns (N, C, 2L) if interleave else (N, 2, C, L) even/odd output planes.
    """
    N, C, L = x.shape
    if with_conv and (weight is None or bias is None):
        raise ValueError("with_conv=True requires weight and bias")

    Lt = _pick_l_tile(L, C, l_tile_budget_bytes, with_conv)
    J = L // Lt

    # One-column halos per L-tile (clamped at the sequence edges), shaped
    # (N, J, C, 1) so each grid step DMAs just a single column.
    starts = jnp.arange(J, dtype=jnp.int32) * Lt
    left_idx = jnp.maximum(starts - 1, 0)
    right_idx = jnp.minimum(starts + Lt, L - 1)
    lhalo = jnp.transpose(jnp.take(x, left_idx, axis=2), (0, 2, 1))[..., None]
    rhalo = jnp.transpose(jnp.take(x, right_idx, axis=2), (0, 2, 1))[..., None]

    kernel = functools.partial(_upsample_kernel, with_conv, compute_dtype)

    in_specs = [
        pl.BlockSpec((None, C, Lt), lambda n, j: (n, 0, j)),
        pl.BlockSpec((None, None, C, 1), lambda n, j: (n, j, 0, 0)),
        pl.BlockSpec((None, None, C, 1), lambda n, j: (n, j, 0, 0)),
    ]
    args = [x, lhalo, rhalo]
    if with_conv:
        # (C_out, C_in, 3) -> (C_out, 3*C_in): taps [t-1 | t | t+1] stacked along K.
        w_f = jnp.transpose(weight, (0, 2, 1)).reshape(C, 3 * C)
        if compute_dtype is not None:
            w_f = w_f.astype(compute_dtype)
        b2 = bias.reshape(C, 1).astype(jnp.float32)
        # Constant index_map -> weights DMA'd once, kept VMEM-resident across the grid.
        in_specs += [
            pl.BlockSpec((C, 3 * C), lambda n, j: (0, 0)),
            pl.BlockSpec((C, 1), lambda n, j: (0, 0)),
        ]
        args += [w_f, b2]

    out = pl.pallas_call(
        kernel,
        grid=(N, J),
        in_specs=in_specs,
        out_specs=pl.BlockSpec((None, 2, C, Lt), lambda n, j: (n, 0, 0, j)),
        out_shape=jax.ShapeDtypeStruct((N, 2, C, L), x.dtype),
        compiler_params=pltpu.CompilerParams(
            dimension_semantics=("parallel", "parallel"),
            vmem_limit_bytes=48 * 1024 * 1024,
        ),
    )(*args)

    if not interleave:
        return out                      # (N, 2, C, L): even / odd output planes
    # PyTorch-parity layout: interleave even/odd along length (one XLA transpose).
    # Downstream consumers that can use the plane layout should pass interleave=False.
    return jnp.transpose(out, (0, 2, 3, 1)).reshape(N, C, 2 * L)


# ----------------------------- references (plain JAX) -----------------------
def _interp_linear_ref(x):
    """PyTorch F.interpolate(scale_factor=2, mode='linear', align_corners=False)."""
    L = x.shape[-1]
    i = jnp.arange(2 * L, dtype=jnp.float32)
    real = jnp.clip(0.5 * i - 0.25, 0.0, None)
    idx0 = jnp.floor(real).astype(jnp.int32)
    idx1 = jnp.minimum(idx0 + 1, L - 1)
    lam = real - idx0.astype(jnp.float32)
    return x[..., idx0] * (1.0 - lam) + x[..., idx1] * lam


def _conv1d_ref(y, weight, bias):
    z = lax.conv_general_dilated(
        y, weight, window_strides=(1,), padding=[(1, 1)],
        dimension_numbers=("NCH", "OIH", "NCH"))
    return z + bias[None, :, None]


if __name__ == "__main__":
    key = jax.random.PRNGKey(0)
    k1, k2, k3, k4 = jax.random.split(key, 4)

    # --- main test: small shapes --------------------------------------------
    N, C, L = 2, 4, 16
    x = jax.random.normal(k1, (N, C, L), dtype=jnp.float32)
    bound = 1.0 / math.sqrt(C * 3)
    weight = jax.random.uniform(k2, (C, C, 3), jnp.float32, -bound, bound)
    bias = jax.random.uniform(k3, (C,), jnp.float32, -bound, bound)

    y_ref = _interp_linear_ref(x)
    z_ref = _conv1d_ref(y_ref, weight, bias)

    out = jax.block_until_ready(upsample(x, weight, bias, with_conv=True))
    assert out.shape == (N, C, 2 * L)
    err = float(jnp.max(jnp.abs(out - z_ref)))
    assert err < 1e-4, f"with_conv=True mismatch: {err}"

    # Deinterleaved (even/odd plane) output path.
    planes = jax.block_until_ready(upsample(x, weight, bias, interleave=False))
    assert planes.shape == (N, 2, C, L)
    err_e = float(jnp.max(jnp.abs(planes[:, 0] - z_ref[..., 0::2])))
    err_o = float(jnp.max(jnp.abs(planes[:, 1] - z_ref[..., 1::2])))
    assert max(err_e, err_o) < 2e-4, f"plane-layout mismatch: {err_e}, {err_o}"

    # No-conv path.
    out_nc = jax.block_until_ready(upsample(x, with_conv=False))
    err_nc = float(jnp.max(jnp.abs(out_nc - y_ref)))
    assert err_nc < 1e-5, f"with_conv=False mismatch: {err_nc}"

    # bf16 MXU operands (f32 accumulation) -- looser tolerance.
    out_bf = jax.block_until_ready(
        upsample(x, weight, bias, compute_dtype=jnp.bfloat16))
    err_bf = float(jnp.max(jnp.abs(out_bf - z_ref)))
    assert err_bf < 1e-1, f"bf16 path mismatch: {err_bf}"

    # --- tiled test: force Lt=128 so the L-grid / halo / roll path runs ------
    N2, C2, L2 = 2, 8, 256
    x2 = jax.random.normal(k4, (N2, C2, L2), dtype=jnp.float32)
    bound2 = 1.0 / math.sqrt(C2 * 3)
    w2 = jax.random.uniform(k2, (C2, C2, 3), jnp.float32, -bound2, bound2)
    b2 = jax.random.uniform(k3, (C2,), jnp.float32, -bound2, bound2)
    out2 = jax.block_until_ready(
        upsample(x2, w2, b2, l_tile_budget_bytes=1))   # forces Lt=128, J=2
    z2_ref = _conv1d_ref(_interp_linear_ref(x2), w2, b2)
    err2 = float(jnp.max(jnp.abs(out2 - z2_ref)))
    assert err2 < 1e-4, f"tiled with_conv=True mismatch: {err2}"

    print("KERNEL_OK")
</pallas_src>

<mosaic_0001>
module attributes {stable_mosaic.version = 11 : i64} {
  func.func @_upsample_kernel(%arg0: i32, %arg1: i32, %arg2: memref<1x4x16xf32, #tpu.memory_space<vmem>>, %arg3: memref<1x1x4x1xf32, #tpu.memory_space<vmem>>, %arg4: memref<1x1x4x1xf32, #tpu.memory_space<vmem>>, %arg5: memref<4x12xf32, #tpu.memory_space<vmem>>, %arg6: memref<4x1xf32, #tpu.memory_space<vmem>>, %arg7: memref<1x2x4x16xf32, #tpu.memory_space<vmem>>) attributes {dimension_semantics = [#tpu.dimension_semantics<parallel>, #tpu.dimension_semantics<parallel>], iteration_bounds = array<i64: 2, 1>, scalar_prefetch = 0 : i64, scratch_operands = 0 : i64, tpu.core_type = #tpu.core_type<tc>, window_params = [{transform_indices = @transform_0, window_bounds = array<i64: 1, 4, 16>}, {transform_indices = @transform_1, window_bounds = array<i64: 1, 1, 4, 1>}, {transform_indices = @transform_2, window_bounds = array<i64: 1, 1, 4, 1>}, {pipeline_mode = #tpu.pipeline_mode<synchronous>, transform_indices = @transform_3, window_bounds = array<i64: 4, 12>}, {pipeline_mode = #tpu.pipeline_mode<synchronous>, transform_indices = @transform_4, window_bounds = array<i64: 4, 1>}, {transform_indices = @transform_5, window_bounds = array<i64: 1, 2, 4, 16>}]} {
    %c0 = arith.constant 0 : index
    %c0_0 = arith.constant 0 : index
    %c0_1 = arith.constant 0 : index
    %0 = vector.load %arg2[%c0, %c0_0, %c0_1] : memref<1x4x16xf32, #tpu.memory_space<vmem>>, vector<1x4x16xf32>
    %1 = vector.shape_cast %0 : vector<1x4x16xf32> to vector<4x16xf32>
    %c0_2 = arith.constant 0 : index
    %c0_3 = arith.constant 0 : index
    %c0_4 = arith.constant 0 : index
    %c0_5 = arith.constant 0 : index
    %2 = vector.load %arg3[%c0_2, %c0_3, %c0_4, %c0_5] : memref<1x1x4x1xf32, #tpu.memory_space<vmem>>, vector<1x1x4x1xf32>
    %3 = vector.shape_cast %2 : vector<1x1x4x1xf32> to vector<4x1xf32>
    %c0_6 = arith.constant 0 : index
    %c0_7 = arith.constant 0 : index
    %c0_8 = arith.constant 0 : index
    %c0_9 = arith.constant 0 : index
    %4 = vector.load %arg4[%c0_6, %c0_7, %c0_8, %c0_9] : memref<1x1x4x1xf32, #tpu.memory_space<vmem>>, vector<1x1x4x1xf32>
    %5 = vector.shape_cast %4 : vector<1x1x4x1xf32> to vector<4x1xf32>
    %6 = tpu.iota {dimensions = array<i32: 1>} : vector<4x16xi32>
    %c0_i32 = arith.constant 0 : i32
    %7 = vector.broadcast %c0_i32 : i32 to vector<4x16xi32>
    %8 = arith.cmpi eq, %6, %7 : vector<4x16xi32>
    %c15_i32 = arith.constant 15 : i32
    %9 = vector.broadcast %c15_i32 : i32 to vector<4x16xi32>
    %10 = arith.cmpi eq, %6, %9 : vector<4x16xi32>
    %11 = vector.extract_strided_slice %1 {offsets = [0, 15], sizes = [4, 1], strides = [1, 1]} : vector<4x16xf32> to vector<4x1xf32>
    %12 = vector.extract_strided_slice %1 {offsets = [0, 0], sizes = [4, 15], strides = [1, 1]} : vector<4x16xf32> to vector<4x15xf32>
    %13 = tpu.concatenate %11, %12 in 1 : vector<4x1xf32>, vector<4x15xf32> -> vector<4x16xf32>
    %14 = vector.shape_cast %3 : vector<4x1xf32> to vector<4x1xf32>
    %15 = vector.broadcast %14 : vector<4x1xf32> to vector<4x16xf32>
    %16 = arith.select %8, %15, %13 : vector<4x16xi1>, vector<4x16xf32>
    %17 = vector.extract_strided_slice %1 {offsets = [0, 1], sizes = [4, 15], strides = [1, 1]} : vector<4x16xf32> to vector<4x15xf32>
    %18 = vector.extract_strided_slice %1 {offsets = [0, 0], sizes = [4, 1], strides = [1, 1]} : vector<4x16xf32> to vector<4x1xf32>
    %19 = tpu.concatenate %17, %18 in 1 : vector<4x15xf32>, vector<4x1xf32> -> vector<4x16xf32>
    %20 = vector.shape_cast %5 : vector<4x1xf32> to vector<4x1xf32>
    %21 = vector.broadcast %20 : vector<4x1xf32> to vector<4x16xf32>
    %22 = arith.select %10, %21, %19 : vector<4x16xi1>, vector<4x16xf32>
    %cst = arith.constant 2.500000e-01 : f32
    %23 = vector.broadcast %cst : f32 to vector<4x16xf32>
    %24 = arith.mulf %23, %16 : vector<4x16xf32>
    %cst_10 = arith.constant 7.500000e-01 : f32
    %25 = vector.broadcast %cst_10 : f32 to vector<4x16xf32>
    %26 = arith.mulf %25, %1 : vector<4x16xf32>
    %27 = arith.addf %24, %26 : vector<4x16xf32>
    %cst_11 = arith.constant 7.500000e-01 : f32
    %28 = vector.broadcast %cst_11 : f32 to vector<4x16xf32>
    %29 = arith.mulf %28, %1 : vector<4x16xf32>
    %cst_12 = arith.constant 2.500000e-01 : f32
    %30 = vector.broadcast %cst_12 : f32 to vector<4x16xf32>
    %31 = arith.mulf %30, %22 : vector<4x16xf32>
    %32 = arith.addf %29, %31 : vector<4x16xf32>
    %c0_i32_13 = arith.constant 0 : i32
    %33 = arith.cmpi eq, %arg1, %c0_i32_13 : i32
    %c0_i32_14 = arith.constant 0 : i32
    %34 = arith.cmpi eq, %arg1, %c0_i32_14 : i32
    %35 = vector.broadcast %33 : i1 to vector<4x16xi1>
    %36 = arith.andi %35, %8 : vector<4x16xi1>
    %cst_15 = arith.constant 7.500000e-01 : f32
    %37 = vector.broadcast %cst_15 : f32 to vector<4x16xf32>
    %38 = arith.mulf %37, %16 : vector<4x16xf32>
    %cst_16 = arith.constant 2.500000e-01 : f32
    %39 = vector.broadcast %cst_16 : f32 to vector<4x16xf32>
    %40 = arith.mulf %39, %1 : vector<4x16xf32>
    %41 = arith.addf %38, %40 : vector<4x16xf32>
    %cst_17 = arith.constant 0.000000e+00 : f32
    %42 = vector.broadcast %cst_17 : f32 to vector<4x16xf32>
    %43 = arith.select %36, %42, %41 : vector<4x16xi1>, vector<4x16xf32>
    %44 = vector.broadcast %34 : i1 to vector<4x16xi1>
    %45 = arith.andi %44, %10 : vector<4x16xi1>
    %cst_18 = arith.constant 2.500000e-01 : f32
    %46 = vector.broadcast %cst_18 : f32 to vector<4x16xf32>
    %47 = arith.mulf %46, %1 : vector<4x16xf32>
    %cst_19 = arith.constant 7.500000e-01 : f32
    %48 = vector.broadcast %cst_19 : f32 to vector<4x16xf32>
    %49 = arith.mulf %48, %22 : vector<4x16xf32>
    %50 = arith.addf %47, %49 : vector<4x16xf32>
    %cst_20 = arith.constant 0.000000e+00 : f32
    %51 = vector.broadcast %cst_20 : f32 to vector<4x16xf32>
    %52 = arith.select %45, %51, %50 : vector<4x16xi1>, vector<4x16xf32>
    %53 = tpu.concatenate %43, %27, %32 in 0 : vector<4x16xf32>, vector<4x16xf32>, vector<4x16xf32> -> vector<12x16xf32>
    %54 = tpu.concatenate %27, %32, %52 in 0 : vector<4x16xf32>, vector<4x16xf32>, vector<4x16xf32> -> vector<12x16xf32>
    %c0_21 = arith.constant 0 : index
    %c0_22 = arith.constant 0 : index
    %55 = vector.load %arg5[%c0_21, %c0_22] : memref<4x12xf32, #tpu.memory_space<vmem>>, vector<4x12xf32>
    %c0_23 = arith.constant 0 : index
    %c0_24 = arith.constant 0 : index
    %56 = vector.load %arg6[%c0_23, %c0_24] : memref<4x1xf32, #tpu.memory_space<vmem>>, vector<4x1xf32>
    %cst_25 = arith.constant dense<0.000000e+00> : vector<4x16xf32>
    %57 = tpu.matmul %55, %53, %cst_25 {dimension_numbers = #tpu.dot_dimension_numbers<[1], [0], [0], [1], [0, 0, 1, 1], [], []>} : vector<4x12xf32>, vector<12x16xf32>, vector<4x16xf32> -> vector<4x16xf32>
    %58 = vector.broadcast %56 : vector<4x1xf32> to vector<4x16xf32>
    %59 = arith.addf %57, %58 : vector<4x16xf32>
    %cst_26 = arith.constant dense<0.000000e+00> : vector<4x16xf32>
    %60 = tpu.matmul %55, %54, %cst_26 {dimension_numbers = #tpu.dot_dimension_numbers<[1], [0], [0], [1], [0, 0, 1, 1], [], []>} : vector<4x12xf32>, vector<12x16xf32>, vector<4x16xf32> -> vector<4x16xf32>
    %61 = vector.broadcast %56 : vector<4x1xf32> to vector<4x16xf32>
    %62 = arith.addf %60, %61 : vector<4x16xf32>
    %c0_27 = arith.constant 0 : index
    %c0_28 = arith.constant 0 : index
    %c0_29 = arith.constant 0 : index
    %c0_30 = arith.constant 0 : index
    %63 = vector.load %arg7[%c0_27, %c0_28, %c0_29, %c0_30] : memref<1x2x4x16xf32, #tpu.memory_space<vmem>>, vector<1x1x4x16xf32>
    %64 = vector.shape_cast %63 : vector<1x1x4x16xf32> to vector<4x16xf32>
    %65 = vector.shape_cast %59 : vector<4x16xf32> to vector<1x1x4x16xf32>
    tpu.vector_store %arg7[%c0_27, %c0_28, %c0_29, %c0_30], %65 {strides = array<i32>} : memref<1x2x4x16xf32, #tpu.memory_space<vmem>>, vector<1x1x4x16xf32>,
    %c0_31 = arith.constant 0 : index
    %c1 = arith.constant 1 : index
    %c0_32 = arith.constant 0 : index
    %c0_33 = arith.constant 0 : index
    %66 = vector.load %arg7[%c0_31, %c1, %c0_32, %c0_33] : memref<1x2x4x16xf32, #tpu.memory_space<vmem>>, vector<1x1x4x16xf32>
    %67 = vector.shape_cast %66 : vector<1x1x4x16xf32> to vector<4x16xf32>
    %68 = vector.shape_cast %62 : vector<4x16xf32> to vector<1x1x4x16xf32>
    tpu.vector_store %arg7[%c0_31, %c1, %c0_32, %c0_33], %68 {strides = array<i32>} : memref<1x2x4x16xf32, #tpu.memory_space<vmem>>, vector<1x1x4x16xf32>,
    return
  }
  func.func @transform_0(%arg0: i32, %arg1: i32) -> (i32, i32, i32) {
    %c0_i32 = arith.constant 0 : i32
    %c0_i32_0 = arith.constant 0 : i32
    return %arg0, %c0_i32, %arg1 : i32, i32, i32
  }
  func.func @transform_1(%arg0: i32, %arg1: i32) -> (i32, i32, i32, i32) {
    %c0_i32 = arith.constant 0 : i32
    %c0_i32_0 = arith.constant 0 : i32
    %c0_i32_1 = arith.constant 0 : i32
    return %arg0, %arg1, %c0_i32, %c0_i32_0 : i32, i32, i32, i32
  }
  func.func @transform_2(%arg0: i32, %arg1: i32) -> (i32, i32, i32, i32) {
    %c0_i32 = arith.constant 0 : i32
    %c0_i32_0 = arith.constant 0 : i32
    %c0_i32_1 = arith.constant 0 : i32
    return %arg0, %arg1, %c0_i32, %c0_i32_0 : i32, i32, i32, i32
  }
  func.func @transform_3(%arg0: i32, %arg1: i32) -> (i32, i32) {
    %c0_i32 = arith.constant 0 : i32
    %c0_i32_0 = arith.constant 0 : i32
    %c0_i32_1 = arith.constant 0 : i32
    return %c0_i32, %c0_i32_0 : i32, i32
  }
  func.func @transform_4(%arg0: i32, %arg1: i32) -> (i32, i32) {
    %c0_i32 = arith.constant 0 : i32
    %c0_i32_0 = arith.constant 0 : i32
    %c0_i32_1 = arith.constant 0 : i32
    return %c0_i32, %c0_i32_0 : i32, i32
  }
  func.func @transform_5(%arg0: i32, %arg1: i32) -> (i32, i32, i32, i32) {
    %c0_i32 = arith.constant 0 : i32
    %c0_i32_0 = arith.constant 0 : i32
    %c0_i32_1 = arith.constant 0 : i32
    return %arg0, %c0_i32, %c0_i32_0, %arg1 : i32, i32, i32, i32
  }
}

</mosaic_0001>

<bundles_post_ra>
// kernel: tpu_custom_call.1
= control target key start
LH: loop header
LB: loop body
LE: loop exit
PB: predicated region body
PF: predicated region fallthrough
CT: control target
= control target key end

     0   :  { %10 = vsyncpa [#allocation3], 0  ;;  %s860_s0 = inlined_call_operand.vmem [shape: f32[2,4,16], index: 0, kind: input, shape index: {}]   ;;  %s861_s1 = inlined_call_operand.vmem [shape: f32[2,1,4,1], index: 1, kind: input, shape index: {}]   ;;  %s862_s2 = inlined_call_operand.vmem [shape: f32[2,1,4,1], index: 2, kind: input, shape index: {}]   ;;  %s863_s3 = inlined_call_operand.vmem [shape: f32[4,12], index: 3, kind: input, shape index: {}]   ;;  %s864_s4 = inlined_call_operand.vmem [shape: f32[4,1], index: 4, kind: input, shape index: {}]   ;;  %s865_s5 = inlined_call_operand.hbm [shape: f32[2,2,4,16], index: 5, kind: output, shape index: {}]  }
   0x1   :  { %12 = vsyncpa [#allocation3 + $0x1], 0  ;;  %s747_s18 = smov 0   ;;  %s749_s19 = smov 0  }
   0x2   :  { %s751_s20 = smov 0   ;;  %s753_s21 = smov 0  }
   0x3   :  { %s755_s22 = smov 0   ;;  %s757_s23 = smov 0  }
   0x4 LB: > { %s546_s24 = sadd.s32 4294967295, %s708_s23   ;;  %s547_s25 = sadd.s32 4294967294, %s708_s23   ;;  %s708_s23 = sphi %s757_s23, %s18_s23   ;;  %s704_s22 = sphi %s755_s22, %s872_s22   ;;  %s700_s21 = sphi %s753_s21, %s871_s21   ;;  %s696_s20 = sphi %s751_s20, %s870_s20   ;;  %s692_s19 = sphi %s749_s19, %s869_s19   ;;  %s688_s18 = sphi %s747_s18, %s868_s18  }
   0x5   : > { %s30_s26 = sadd.s32 1, %s704_s22  ;;  %s165_s27 = sadd.s32 1, %s696_s20 }
   0x6   : > { %p32_p0 = scmp.ge.s32.totalorder %s30_s26, 2  ;;  %p175_p1 = scmp.ne.s32.totalorder %s696_s20, %s692_s19 }
   0x7   : > { %p176_p2 = scmp.eq.s32.totalorder %s546_s24, 1  ;;  %p181_p3 = scmp.ne.s32.totalorder %s692_s19, %s688_s18 }
   0x8   : > { %s874_s26 = smov (%p32_p0, %s30_s26), 0  ;;  %p182_p5 = scmp.eq.s32.totalorder %s547_s25, 1 }
   0x9   : > { %p787_p4 = por %p176_p2, %p175_p1  ;;  %s160_s29 = ssub.s32 %s704_s22, %s874_s26 }
   0xa   : > { %p550_p6 = scmp.ge.s32.totalorder %s708_s23, 1  ;;  %p163_p7 = scmp.eq.s32.totalorder %s160_s29, 0 }
   0xb   : > { %p794_p8 = por %p182_p5, %p181_p3  ;;  %p236_p9 = scmp.lt.s32.totalorder %s708_s23, 3 }
   0xc   : > { %s800_s6 = scalar_select %p163_p7, %s696_s20, %s165_s27  }
   0xd   : > { %p237_p10 = pnand %p550_p6, %p236_p9 }
   0xe   : > { %p280_p11 = scmp.lt.s32.totalorder (!%p237_p10), %s700_s21, 1  ;;  %s711_s15 = smov (!%p237_p10), 127  }
   0xf   : > { %240 = sbr.rel (%p237_p10) target bundleno = 291 (0x123), region = 40  ;;  %s712_s16 = smov (!%p237_p10), 113  }
  0x10   : > { %s713_s27 = smov (!%p237_p10), 15   ;;  %s714_s29 = smov (!%p237_p10), 1  }
  0x11   : > { %s565_s13 = sshll.u32 (!%p237_p10), %s700_s21, 3 }
  0x14   : > { %v710_v0 = vmov 0   ;;  %s281_s7 = scalar_select %p280_p11, %s700_s21, 1  ;;  %v365_v4 = vld [vmem:[%s864_s4] sm:$0xf]  ;;  %v304_v6 = vlaneseq  ;;  %vm329_vm0 = vcmask 121856   ;;  %vm315_vm1 = vcmask 7168  }
  0x15   : > { %628 = vset.pattern.permute.xlu2 %v710_v0  ;;  %629 = vset.pattern.permute.xlu0 %v710_v0  ;;  %vm358_vm4 = vcmask 1043456   ;;  %v364_v31 = vld [vmem:[%s863_s3] sm:$0xf]  ;;  %vm371_vm5 = vcmask 97280   ;;  %vm420_vm6 = vcmask 125952  }
  0x16   : > { %s552_s8 = sshll.u32 %s281_s7, 2  ;;  %v305_v9 = vand.u32 127, %v304_v6 }
  0x17   : > { %s286_s11 = scalar_lea.vmem %s860_s0, %s552_s8  ;;  %s293_s14 = scalar_lea.vmem %s861_s1, %s552_s8 }
  0x18   : > { %v301_v1 = vld [vmem:[%s286_s11] sm:$0xf]  ;;  %s300_s25 = scalar_lea.vmem %s862_s2, %s552_s8  ;;  %vm307_vm2 = vcmp.eq.s32.totalorder %v305_v9, 15  ;;  %vm306_vm3 = vcmp.eq.s32.totalorder %v305_v9, 0  ;;  %s277_s11 = sand.u32 1, %s692_s19  }
  0x19   : > { %v302_v2 = vld [vmem:[%s293_s14] sm:$0xf]  ;;  %323 = vrot.lane.b32.xlu1 %v301_v1, %s711_s15  ;;  %309 = vrot.lane.b32.xlu0 %v301_v1, %s712_s16  ;;  %v338_v15 = vmul.f32 0.75, %v301_v1  ;;  %v348_v16 = vmul.f32 0.25, %v301_v1  ;;  %s551_s12 = sshll.u32 %s277_s11, 3  ;;  %s437_s16 = scalar_lea.hbm %s865_s5, %s565_s13 }
  0x1a   : > { %319 = vperm.xlu2 %628, %v302_v2   ;;  %v303_v3 = vld [vmem:[%s300_s25] sm:$0xf]  ;;  %s279_s17 = scalar_lea.vmem [#allocation2], %s551_s12  ;;  %s440_s25 = sshll.u32 %s437_s16, 4  ;;  %s441_s25 = int_to_ptr.hbm [resolvable:$true] %s440_s25 }
  0x1b   : > { %s438_s24 = sshll.u32 %s279_s17, 4  ;;  %s644_s21 = sshra.s32 %s441_s25, 4  ;;  %s439_s24 = int_to_ptr.vmem [resolvable:$true] %s438_s24  ;;  %s645_s21 = int_to_ptr.hbm [resolvable:$true] %s644_s21 }
  0x1c   : > { %s650_s8 = scalar_lea.hbm %s865_s5, 16  ;;  %p651_p1 = scmp.lt.s32.totalorder %s645_s21, %s865_s5 }
  0x21   : > { %326 = vrot.lane.b32.xlu1 %v301_v1, %s713_s27  ;;  %312 = vrot.lane.b32.xlu0 %v301_v1, %s714_s29  ;;  %s425_s27 = scalar_lea.sflag [#allocation3], %s277_s11  ;;  %s646_s29 = scalar_lea.hbm %s645_s21, 8 }
  0x22   : > { %333 = vperm.xlu2 %628, %v303_v3   ;;  %p647_p12 = scmp.ne.s32.totalorder %s645_s21, %s646_s29  ;;  %p652_p2 = scmp.lt.s32.totalorder %s650_s8, %s646_s29 }
  0x24   : > { %p648_p13 = pnand %p647_p12, %p787_p4  ;;  %p653_p3 = por %p652_p2, %p651_p1 }
  0x26   : > { %p649_p0 = pneg %p648_p13 }
  0x28   : > { %p654_p5 = pnand %p653_p3, %p649_p0 }
  0x29   : > { %368 = vperm.xlu0 %629, %v365_v4  }
  0x74   : > { %v320_v5 = vpop.permute.xlu2 %319 }
  0x7c   : > { %v334_v12 = vpop.permute.xlu2 %333 }
  0x8b   : > { %v324_v7 = vpop.permute.xlu1 %323  ;;  %v310_v8 = vpop.permute.xlu0 %309 }
  0x93   : > { %v327_v10 = vpop.permute.xlu1 %326  ;;  %v313_v11 = vpop.permute.xlu0 %312 }
  0x94   : > { %v330_v13 = vsel %vm329_vm0, %v324_v7, %v327_v10  ;;  %v316_v14 = vsel %vm315_vm1, %v310_v8, %v313_v11 }
  0x95   : > { %v336_v17 = vsel %vm307_vm2, %v334_v12, %v330_v13  ;;  %v322_v18 = vsel %vm306_vm3, %v320_v5, %v316_v14 }
  0x96   : > { %v340_v19 = vmul.f32 0.25, %v336_v17  ;;  %v352_v20 = vmul.f32 0.75, %v336_v17  ;;  %v337_v21 = vmul.f32 0.25, %v322_v18  ;;  %v347_v22 = vmul.f32 0.75, %v322_v18 }
  0x98   : > { %v341_v23 = vadd.f32 %v340_v19, %v338_v15  ;;  %v353_v24 = vadd.f32 %v352_v20, %v348_v16  ;;  %v339_v25 = vadd.f32 %v338_v15, %v337_v21  ;;  %v349_v26 = vadd.f32 %v348_v16, %v347_v22 }
  0x9a   : > { %v361_v27 = vrot.slane %v341_v23, 4  ;;  %555 = vmatpush.msk.msra.mxu0 %vm358_vm4, %v341_v23  ;;  %v354_v28 = vsel %vm307_vm2, 0.0, %v353_v24  ;;  %v350_v29 = vsel %vm306_vm3, 0.0, %v349_v26  ;;  %v356_v30 = vrot.slane %v339_v25, 4 }
  0x9b   : > { %557 = vmatpush.msk.msra.mxu1 %vm358_vm4, %v354_v28  ;;  %v369_v34 = vpop.permute.xlu0 %368 }
  0x9c   : > { %v359_v32 = vsel %vm358_vm4, %v350_v29, %v356_v30  ;;  %v363_v33 = vsel %vm358_vm4, %v339_v25, %v361_v27 }
  0x9d   : > { %392 = vmatpush.msra.mxu0 %v359_v32  ;;  %415 = vmatpush.msra.mxu1 %v363_v33 }
  0x9e   : > { %556 = vmatmul.msk.f32.vlgmr.msra.gmra.mxu0 %vm371_vm5, %v364_v31  ;;  %558 = vmatmul.msk.f32.vlgmr.msra.gmra.mxu1 %vm371_vm5, %v364_v31 }
 0x11b   : > { %v394_v35 = vpop.f32.mrf.mxu0  ;;  %v417_v36 = vpop.f32.mrf.mxu1 }
 0x11c   : > { %v395_v37 = vadd.f32 %v394_v35, %v369_v34  ;;  %v418_v38 = vadd.f32 %v417_v36, %v369_v34 }
 0x11e   : > { %421 = vst.msk [vmem:[%s279_s17] sm:$0xf] %vm420_vm6, %v395_v37 }
 0x11f   : > { %559 = vst.msk [vmem:[%s279_s17 + $0x4] sm:$0xf] %vm420_vm6, %v418_v38 }
 0x120   : > { %657 = shalt.err (!%p654_p5)
}
 0x121   : > { %s715_s11 = smov 64   ;;  %s716_s13 = smov 4  }
 0x122   : > { %566 = dma.vmem_to_hbm [thread:$0]  (%p787_p4), %s439_s24, 128, %s441_s25, %s425_s27, %s715_s11, %s715_s11, %s716_s13  }
 0x123 PF: > { %p572_p6 = scmp.ge.s32.totalorder %s708_s23, 2  ;;  %s455_s14 = sand.u32 1, %s688_s18  }
 0x124   : > { %s456_s15 = scalar_lea.sflag [#allocation3], %s455_s14 }
 0x125   : > { %p569_p7 = pnand %p572_p6, %p794_p8 }
 0x127   : > { %p570_p9 = pneg %p569_p7 }
 0x129   : > { %683 = dma.done.wait (%p570_p9), %s456_s15, 128  }
 0x12a   : > { %685 = vsyncadd (%p570_p9), %s456_s15, 4294967168  ;;  %s18_s23 = sadd.s32 1, %s708_s23   ;;  %s868_s18 = smov %s692_s19 }
 0x12b   : > { %p15_p10 = scmp.ge.s32.totalorder %s18_s23, 4   ;;  %s869_s19 = smov %s696_s20 }
 0x12c   : > { %s870_s20 = smov %s800_s6  ;;  %s871_s21 = smov %s704_s22 }
 0x12d   : > { %s872_s22 = smov %s874_s26  ;;  %17 = sbr.rel (!%p15_p10) target bundleno = 4 (0x4), region = 82 }
 0x132   :  { %462 = vsyncpa [#allocation3], 1 }
 0x133   :  { %464 = vsyncpa [#allocation3 + $0x1], 1 }

</bundles_post_ra>
